<compile_context>
chip_gen: v6e
topology: v6e:2x2x1
jax: 0.10.0
libtpu: 0.0.40
codegen_flags: <defaults>
</compile_context>

<pallas_src>
import functools

import jax
import jax.numpy as jnp
from jax.experimental import pallas as pl
from jax.experimental.pallas import tpu as pltpu


# ---------------------------------------------------------------------------
# Tunables
# ---------------------------------------------------------------------------
_VMEM_LIMIT_BYTES = 32 * 1024 * 1024   # explicit scoped-VMEM request (all gens)
_TILE_BUDGET_BYTES = 20 * 1024 * 1024  # headroom under the limit for tiles
_MIN_PALLAS_BYTES = 64 * 1024          # below this, plain jnp beats kernel launch
_MAX_ROW_TILE = 2048                   # diminishing returns past ~2K rows


def _sublane_multiple(dtype) -> int:
    """Minimum row multiple for a dense TPU tile, per element width."""
    return {4: 8, 2: 16, 1: 32}.get(jnp.dtype(dtype).itemsize, 8)


def _round_up(x: int, m: int) -> int:
    return ((x + m - 1) // m) * m


def _pick_row_tile(rows: int, k: int, n: int, itemsize: int, sub: int) -> int:
    """Largest sublane-aligned row tile that fits the VMEM tile budget."""
    # Per grid step: double-buffered x tile + out tile, plus (conservatively
    # counted as double-buffered) the resident weight and bias blocks.
    fixed = 2 * (k * n + n) * itemsize
    per_row = 2 * (k + n) * itemsize
    tm = max(sub, (_TILE_BUDGET_BYTES - fixed) // per_row)
    tm = min(tm, _MAX_ROW_TILE)
    if rows >= 2 * sub:
        # Keep >= 2 grid steps so the v7x megacore can shard the row axis.
        tm = min(tm, _round_up(pl.cdiv(rows, 2), sub))
    else:
        tm = min(tm, _round_up(rows, sub))
    return max(sub, (tm // sub) * sub)


# ---------------------------------------------------------------------------
# Pallas kernel: y = x @ W + b, tiled over rows
# ---------------------------------------------------------------------------
def _linear_kernel(x_ref, w_ref, b_ref, o_ref):
    acc = jnp.dot(x_ref[...], w_ref[...], preferred_element_type=jnp.float32)
    o_ref[...] = (acc + b_ref[...].astype(jnp.float32)).astype(o_ref.dtype)


@functools.partial(jax.jit, static_argnames=())
def _linear_impl(x, weight, bias):
    rows, k = x.shape
    _, n = weight.shape

    out_dtype = jnp.result_type(x.dtype, weight.dtype, bias.dtype)
    x = x.astype(out_dtype)
    w = weight.astype(out_dtype)
    b2 = bias.reshape(1, n).astype(out_dtype)

    itemsize = jnp.dtype(out_dtype).itemsize

    # Tiny tensors: kernel launch + HBM<->VMEM round trip dwarfs the work.
    if x.size * itemsize < _MIN_PALLAS_BYTES:
        return (x @ w + b2).astype(out_dtype)

    sub = _sublane_multiple(out_dtype)
    tm = _pick_row_tile(rows, k, n, itemsize, sub)
    grid = (pl.cdiv(rows, tm),)  # short last tile; OOB output rows discarded

    in_specs = [
        pl.BlockSpec((tm, k), lambda i: (i, 0)),   # x row tile (streams)
        pl.BlockSpec((k, n), lambda i: (0, 0)),    # full weight, VMEM-resident
        pl.BlockSpec((1, n), lambda i: (0, 0)),    # bias, VMEM-resident
    ]
    out_specs = pl.BlockSpec((tm, n), lambda i: (i, 0))

    cost = pl.CostEstimate(
        flops=2 * rows * k * n,
        transcendentals=0,
        bytes_accessed=(rows * k + k * n + n + rows * n) * itemsize,
    )

    return pl.pallas_call(
        _linear_kernel,
        out_shape=jax.ShapeDtypeStruct((rows, n), out_dtype),
        grid=grid,
        in_specs=in_specs,
        out_specs=out_specs,
        compiler_params=pltpu.CompilerParams(
            dimension_semantics=("parallel",),
            vmem_limit_bytes=_VMEM_LIMIT_BYTES,
        ),
        cost_estimate=cost,
    )(x, w, b2)


def pallas_linear(x, weight, bias):
    """Row-wise dense layer y = x @ W + b via a Pallas TPU kernel.

    x:      [rows, in_features]
    weight: [in_features, out_features]
    bias:   [out_features]
    """
    rows, k = x.shape
    k2, n = weight.shape
    assert k == k2, f"in_features mismatch: {k} vs {k2}"
    assert bias.shape == (n,), f"bias shape mismatch: {bias.shape} vs ({n},)"
    return _linear_impl(x, weight, bias)


# ---------------------------------------------------------------------------
# Model + module ports
# ---------------------------------------------------------------------------
class PallasLinear:
    """Deterministic Linear layer whose forward runs the Pallas kernel."""

    def __init__(self, in_features, out_features, key, dtype=jnp.float32):
        kw, kb = jax.random.split(key)
        scale = 1.0 / (in_features ** 0.5)
        self.weight = jax.random.uniform(
            kw, (in_features, out_features), dtype, -scale, scale)
        self.bias = jax.random.uniform(
            kb, (out_features,), dtype, -scale, scale)

    def forward(self, x):
        return pallas_linear(x, self.weight, self.bias)

    __call__ = forward


class Graph:
    """Minimal graph container mirroring the PyTorch Graph/UnionGraph interface."""

    def __init__(self, node_features, edge_features, graph_features):
        self.node_features = node_features
        self.edge_features = edge_features
        self.graph_features = graph_features


class FeatureProcessor:
    """JAX/Pallas port of graphlearn.nn.transforms.FeatureProcessor."""

    def __init__(self, modle, attribute, key=None):
        assert attribute in ['node', 'edge', 'graph'], \
            'attribute must be on of "node", "edge" or "graph"'
        self.modle = modle
        self.attribute = attribute
        self.key = key

    def __call__(self, batch):
        attr = getattr(batch, f'{self.attribute}_features')
        if self.key and isinstance(attr, dict):
            attr[self.key] = self.modle.forward(attr[self.key])
        elif isinstance(attr, jax.Array):
            tensor = self.modle.forward(attr)
            setattr(batch, f'{self.attribute}_features', tensor)
        else:
            raise KeyError('The provided key is invalid.')
        return batch

    forward = __call__


# ---------------------------------------------------------------------------
# Demo / correctness check
# ---------------------------------------------------------------------------
if __name__ == "__main__":
    root = jax.random.PRNGKey(0)
    k = jax.random.split(root, 8)

    # Small deterministic graph.  Node table is big enough to take the Pallas
    # path; edge row count is deliberately not a multiple of 8 to exercise the
    # short last tile; graph-level features are tiny (jnp fallback path).
    num_nodes, num_edges, num_graphs = 1024, 1000, 2
    d_node, d_edge, d_graph = 64, 48, 16
    d_out = 128  # lane-dense (multiple of 128) output width

    node_features = {
        "x":     jax.random.normal(k[0], (num_nodes, d_node), jnp.float32),
        "extra": jax.random.normal(k[1], (num_nodes, 8), jnp.float32),
    }
    edge_features = jax.random.normal(k[2], (num_edges, d_edge), jnp.float32)
    graph_features = {
        "g": jax.random.normal(k[3], (num_graphs, d_graph), jnp.float32),
    }

    # Keep handles to the original inputs (FeatureProcessor mutates the dicts).
    x_node_in = node_features["x"]
    extra_in = node_features["extra"]
    edge_in = edge_features
    g_in = graph_features["g"]

    batch = Graph(node_features, edge_features, graph_features)

    node_model = PallasLinear(d_node, d_out, k[4])
    edge_model = PallasLinear(d_edge, d_out, k[5])
    graph_model = PallasLinear(d_graph, d_out, k[6])

    node_proc = FeatureProcessor(node_model, attribute='node', key='x')    # dict + key path
    edge_proc = FeatureProcessor(edge_model, attribute='edge')             # tensor-attribute path
    graph_proc = FeatureProcessor(graph_model, attribute='graph', key='g') # tiny -> jnp fallback

    batch = node_proc(batch)
    batch = edge_proc(batch)
    batch = graph_proc(batch)

    jax.block_until_ready(batch.node_features["x"])
    jax.block_until_ready(batch.edge_features)
    jax.block_until_ready(batch.graph_features["g"])

    # Reference (plain JAX, same semantics as applying the Linear in torch).
    ref_node = x_node_in @ node_model.weight + node_model.bias
    ref_edge = edge_in @ edge_model.weight + edge_model.bias
    ref_graph = g_in @ graph_model.weight + graph_model.bias

    assert batch.node_features["x"].shape == (num_nodes, d_out)
    assert batch.edge_features.shape == (num_edges, d_out)
    assert batch.graph_features["g"].shape == (num_graphs, d_out)
    # Untouched keys stay untouched.
    assert batch.node_features["extra"] is extra_in

    assert jnp.allclose(batch.node_features["x"], ref_node, rtol=1e-2, atol=1e-2)
    assert jnp.allclose(batch.edge_features, ref_edge, rtol=1e-2, atol=1e-2)
    assert jnp.allclose(batch.graph_features["g"], ref_graph, rtol=1e-2, atol=1e-2)

    print("KERNEL_OK")
</pallas_src>

<mosaic_0001>
module attributes {stable_mosaic.version = 11 : i64} {
  func.func @_linear_kernel(%arg0: i32, %arg1: memref<512x64xf32, #tpu.memory_space<vmem>>, %arg2: memref<64x128xf32, #tpu.memory_space<vmem>>, %arg3: memref<1x128xf32, #tpu.memory_space<vmem>>, %arg4: memref<512x128xf32, #tpu.memory_space<vmem>>) attributes {dimension_semantics = [#tpu.dimension_semantics<parallel>], iteration_bounds = array<i64: 2>, scalar_prefetch = 0 : i64, scratch_operands = 0 : i64, tpu.core_type = #tpu.core_type<tc>, window_params = [{transform_indices = @transform_0, window_bounds = array<i64: 512, 64>}, {pipeline_mode = #tpu.pipeline_mode<synchronous>, transform_indices = @transform_1, window_bounds = array<i64: 64, 128>}, {pipeline_mode = #tpu.pipeline_mode<synchronous>, transform_indices = @transform_2, window_bounds = array<i64: 1, 128>}, {transform_indices = @transform_3, window_bounds = array<i64: 512, 128>}]} {
    %c0 = arith.constant 0 : index
    %c0_0 = arith.constant 0 : index
    %0 = vector.load %arg1[%c0, %c0_0] : memref<512x64xf32, #tpu.memory_space<vmem>>, vector<512x64xf32>
    %c0_1 = arith.constant 0 : index
    %c0_2 = arith.constant 0 : index
    %1 = vector.load %arg2[%c0_1, %c0_2] : memref<64x128xf32, #tpu.memory_space<vmem>>, vector<64x128xf32>
    %cst = arith.constant dense<0.000000e+00> : vector<512x128xf32>
    %2 = tpu.matmul %0, %1, %cst {dimension_numbers = #tpu.dot_dimension_numbers<[1], [0], [0], [1], [0, 0, 1, 1], [], []>} : vector<512x64xf32>, vector<64x128xf32>, vector<512x128xf32> -> vector<512x128xf32>
    %c0_3 = arith.constant 0 : index
    %c0_4 = arith.constant 0 : index
    %3 = vector.load %arg3[%c0_3, %c0_4] : memref<1x128xf32, #tpu.memory_space<vmem>>, vector<1x128xf32>
    %4 = vector.broadcast %3 : vector<1x128xf32> to vector<512x128xf32>
    %5 = arith.addf %2, %4 : vector<512x128xf32>
    %c0_5 = arith.constant 0 : index
    %c0_6 = arith.constant 0 : index
    %6 = vector.load %arg4[%c0_5, %c0_6] : memref<512x128xf32, #tpu.memory_space<vmem>>, vector<512x128xf32>
    tpu.vector_store %arg4[%c0_5, %c0_6], %5 {strides = array<i32>} : memref<512x128xf32, #tpu.memory_space<vmem>>, vector<512x128xf32>,
    return
  }
  func.func @transform_0(%arg0: i32) -> (i32, i32) {
    %c0_i32 = arith.constant 0 : i32
    %c0_i32_0 = arith.constant 0 : i32
    return %arg0, %c0_i32 : i32, i32
  }
  func.func @transform_1(%arg0: i32) -> (i32, i32) {
    %c0_i32 = arith.constant 0 : i32
    %c0_i32_0 = arith.constant 0 : i32
    %c0_i32_1 = arith.constant 0 : i32
    return %c0_i32, %c0_i32_0 : i32, i32
  }
  func.func @transform_2(%arg0: i32) -> (i32, i32) {
    %c0_i32 = arith.constant 0 : i32
    %c0_i32_0 = arith.constant 0 : i32
    %c0_i32_1 = arith.constant 0 : i32
    return %c0_i32, %c0_i32_0 : i32, i32
  }
  func.func @transform_3(%arg0: i32) -> (i32, i32) {
    %c0_i32 = arith.constant 0 : i32
    %c0_i32_0 = arith.constant 0 : i32
    return %arg0, %c0_i32 : i32, i32
  }
}

</mosaic_0001>

<bundles_post_ra>
// kernel: _linear_impl.1
= control target key start
LH: loop header
LB: loop body
LE: loop exit
PB: predicated region body
PF: predicated region fallthrough
CT: control target
= control target key end

     0   :  { %8 = vsyncpa [#allocation3], 0  ;;  %s1768_s0 = inlined_call_operand.vmem [shape: f32[1024,64], index: 0, kind: input, shape index: {}]   ;;  %s1769_s1 = inlined_call_operand.vmem [shape: f32[64,128], index: 1, kind: input, shape index: {}]   ;;  %s1770_s2 = inlined_call_operand.vmem [shape: f32[1,128], index: 2, kind: input, shape index: {}]   ;;  %s1771_s3 = inlined_call_operand.hbm [shape: f32[1024,128], index: 3, kind: output, shape index: {}]  }
   0x1   :  { %10 = vsyncpa [#allocation3 + $0x1], 0  ;;  %s1373_s12 = smov 0   ;;  %s1375_s13 = smov 0  }
   0x2   :  { %s1377_s14 = smov 0   ;;  %s1379_s15 = smov 0  }
   0x3 LB: > { %s1394_s16 = sadd.s32 4294967295, %s1348_s15   ;;  %s969_s17 = sadd.s32 4294967294, %s1348_s15   ;;  %s1348_s15 = sphi %s1379_s15, %s1777_s15   ;;  %s1344_s14 = sphi %s1377_s14, %s1776_s14   ;;  %s1340_s13 = sphi %s1375_s13, %s1775_s13   ;;  %s1336_s12 = sphi %s1373_s12, %s1774_s12  }
   0x4   : > { %s1398_s18 = sadd.s32 1, %s1348_s15   ;;  %s91_s19 = sadd.s32 1, %s1344_s14 }
   0x5   : > { %s88_s20 = ssub.s32 %s1348_s15, %s1398_s18  ;;  %p101_p0 = scmp.ne.s32.totalorder %s1344_s14, %s1340_s13 }
   0x6   : > { %p89_p1 = scmp.eq.s32.totalorder %s88_s20, 0  ;;  %p102_p2 = scmp.eq.s32.totalorder %s1394_s16, 1 }
   0x7   : > { %p107_p3 = scmp.ne.s32.totalorder %s1340_s13, %s1336_s12  ;;  %p108_p4 = scmp.eq.s32.totalorder %s969_s17, 1 }
   0x8   : > { %s1409_s21 = scalar_select %p89_p1, %s1344_s14, %s91_s19  }
   0x9   : > { %p1411_p5 = por %p102_p2, %p101_p0  ;;  %p1415_p6 = por %p108_p4, %p107_p3 }
   0xa   : > { %p972_p7 = scmp.ge.s32.totalorder %s1348_s15, 1  ;;  %p141_p8 = scmp.lt.s32.totalorder %s1348_s15, 3 }
   0xc   : > { %p142_p9 = pnand %p972_p7, %p141_p8 }
   0xd   : > { %s974_s28 = sshll.u32 (!%p142_p9), %s1394_s16, 6  ;;  %s162_s27 = sand.u32 (!%p142_p9), 1, %s1340_s13  }
   0xe   : > { %145 = sbr.rel (%p142_p9) target bundleno = 308 (0x134), region = 32  ;;  %p166_p10 = scmp.lt.s32.totalorder (!%p142_p9), %s974_s28, 127 }
   0xf   : > { %s1046_s5 = sshll.u32 (!%p142_p9), %s1394_s16, 13  ;;  %s1728_s16 = scalar_lea.sflag (!%p142_p9), [#allocation3], %s162_s27 }
  0x10   : > { %s1716_s9 = scalar_lea.hbm (!%p142_p9), %s1771_s3, %s1046_s5  ;;  %s1350_s11 = smov (!%p142_p9), [#allocation2]  }
  0x11   : > { %s1292_s17 = sshll.u32 (!%p142_p9), %s1350_s11, 4  ;;  %s1293_s17 = int_to_ptr.vmem [resolvable:$false] %s1292_s17 }
  0x12   : > { %s1294_s19 = scalar_lea.vmem (!%p142_p9), %s1293_s17, 16384 }
  0x13   : > { %v243_v0 = vld [vmem:[%s1769_s1 + $0x38] sm:$0xff]  ;;  %v242_v1 = vld [vmem:[%s1769_s1 + $0x30] sm:$0xff]  ;;  %v241_v2 = vld [vmem:[%s1769_s1 + $0x28] sm:$0xff]  ;;  %s1779_s28 = smov (!%p166_p10, %s974_s28), 127  ;;  %vm251_vm0 = vcmask 523264  }
  0x14   : > { %1119 = vmatprep.subr.mxu0 %v243_v0  ;;  %1231 = vmatprep.subr.mxu1 %v243_v0  ;;  %v240_v3 = vld [vmem:[%s1769_s1 + $0x20] sm:$0xff]  ;;  %v239_v4 = vld [vmem:[%s1769_s1 + $0x18] sm:$0xff]  ;;  %v238_v5 = vld [vmem:[%s1769_s1 + $0x10] sm:$0xff]  ;;  %s975_s10 = sshll.u32 %s1779_s28, 3  ;;  %s973_s28 = sshll.u32 %s162_s27, 9 }
  0x15   : > { %1120 = vmatpush3.msra.mxu0 %v243_v0  ;;  %1239 = vmatpush3.msra.mxu1 %v243_v0  ;;  %v237_v6 = vld [vmem:[%s1769_s1 + $0x8] sm:$0xff]  ;;  %s1446_s24 = scalar_lea.vmem %s1768_s0, %s975_s10  ;;  %v236_v7 = vld [vmem:[%s1769_s1] sm:$0xff]  ;;  %s1589_s4 = scalar_lea.vmem [#allocation2], %s973_s28 }
  0x16   : > { %1121 = vmatprep.subr.mxu0 %v242_v1  ;;  %1232 = vmatprep.subr.mxu1 %v242_v1  ;;  %v172_v8 = vld [vmem:[%s1446_s24] sm:$0xff]  ;;  %v173_v10 = vld [vmem:[%s1446_s24 + $0x8] sm:$0xff]  ;;  %v174_v12 = vld [vmem:[%s1446_s24 + $0x10] sm:$0xff]  ;;  %s907_s6 = sshll.u32 %s1589_s4, 4  ;;  %s1718_s6 = int_to_ptr.vmem [resolvable:$true] %s907_s6 }
  0x17   : > { %1122 = vmatpush3.msra.mxu0 %v242_v1  ;;  %1240 = vmatpush3.msra.mxu1 %v242_v1  ;;  %v204_v9 = vld [vmem:[%s1446_s24 + $0x100] sm:$0xff]  ;;  %v205_v11 = vld [vmem:[%s1446_s24 + $0x108] sm:$0xff]  ;;  %v206_v13 = vld [vmem:[%s1446_s24 + $0x110] sm:$0xff]  ;;  %s1288_s10 = scalar_lea.vmem %s1718_s6, 8192  ;;  %p1295_p0 = scmp.lt.s32.totalorder %s1718_s6, %s1293_s17 }
  0x18   : > { %1123 = vmatprep.subr.mxu0 %v241_v2  ;;  %1233 = vmatprep.subr.mxu1 %v241_v2  ;;  %v175_v14 = vld [vmem:[%s1446_s24 + $0x18] sm:$0xff]  ;;  %v176_v16 = vld [vmem:[%s1446_s24 + $0x20] sm:$0xff]  ;;  %v177_v18 = vld [vmem:[%s1446_s24 + $0x28] sm:$0xff]  ;;  %p1289_p11 = scmp.ne.s32.totalorder %s1718_s6, %s1288_s10  ;;  %p1296_p1 = scmp.lt.s32.totalorder %s1294_s19, %s1288_s10 }
  0x19   : > { %1124 = vmatpush3.msra.mxu0 %v241_v2  ;;  %1241 = vmatpush3.msra.mxu1 %v241_v2  ;;  %v207_v15 = vld [vmem:[%s1446_s24 + $0x118] sm:$0xff]  ;;  %v208_v17 = vld [vmem:[%s1446_s24 + $0x120] sm:$0xff]  ;;  %v209_v19 = vld [vmem:[%s1446_s24 + $0x128] sm:$0xff] }
  0x1a   : > { %1125 = vmatprep.subr.mxu0 %v240_v3  ;;  %1234 = vmatprep.subr.mxu1 %v240_v3  ;;  %v178_v20 = vld [vmem:[%s1446_s24 + $0x30] sm:$0xff]  ;;  %v179_v22 = vld [vmem:[%s1446_s24 + $0x38] sm:$0xff]  ;;  %v180_v24 = vld [vmem:[%s1446_s24 + $0x40] sm:$0xff]  ;;  %p1290_p12 = pnand %p1289_p11, %p1411_p5  ;;  %p1297_p2 = por %p1296_p1, %p1295_p0 }
  0x1b   : > { %1126 = vmatpush3.msra.mxu0 %v240_v3  ;;  %1242 = vmatpush3.msra.mxu1 %v240_v3  ;;  %v210_v21 = vld [vmem:[%s1446_s24 + $0x130] sm:$0xff]  ;;  %v211_v23 = vld [vmem:[%s1446_s24 + $0x138] sm:$0xff]  ;;  %v212_v25 = vld [vmem:[%s1446_s24 + $0x140] sm:$0xff] }
  0x1c   : > { %1127 = vmatprep.subr.mxu0 %v239_v4  ;;  %1235 = vmatprep.subr.mxu1 %v239_v4  ;;  %v181_v26 = vld [vmem:[%s1446_s24 + $0x48] sm:$0xff]  ;;  %v182_v28 = vld [vmem:[%s1446_s24 + $0x50] sm:$0xff]  ;;  %v183_v30 = vld [vmem:[%s1446_s24 + $0x58] sm:$0xff]  ;;  %p1291_p13 = pneg %p1290_p12 }
  0x1d   : > { %1128 = vmatpush3.msra.mxu0 %v239_v4  ;;  %1243 = vmatpush3.msra.mxu1 %v239_v4  ;;  %v213_v27 = vld [vmem:[%s1446_s24 + $0x148] sm:$0xff]  ;;  %v214_v29 = vld [vmem:[%s1446_s24 + $0x150] sm:$0xff]  ;;  %v215_v31 = vld [vmem:[%s1446_s24 + $0x158] sm:$0xff] }
  0x1e   : > { %1129 = vmatprep.subr.mxu0 %v238_v5  ;;  %1236 = vmatprep.subr.mxu1 %v238_v5  ;;  %v184_v32 = vld [vmem:[%s1446_s24 + $0x60] sm:$0xff]  ;;  %v185_v34 = vld [vmem:[%s1446_s24 + $0x68] sm:$0xff]  ;;  %v186_v36 = vld [vmem:[%s1446_s24 + $0x70] sm:$0xff]  ;;  %p1298_p3 = pnand %p1297_p2, %p1291_p13 }
  0x1f   : > { %1130 = vmatpush3.msra.mxu0 %v238_v5  ;;  %1244 = vmatpush3.msra.mxu1 %v238_v5  ;;  %v216_v33 = vld [vmem:[%s1446_s24 + $0x160] sm:$0xff]  ;;  %v217_v35 = vld [vmem:[%s1446_s24 + $0x168] sm:$0xff]  ;;  %v218_v37 = vld [vmem:[%s1446_s24 + $0x170] sm:$0xff] }
  0x20   : > { %1131 = vmatprep.subr.mxu0 %v237_v6  ;;  %1237 = vmatprep.subr.mxu1 %v237_v6  ;;  %v187_v38 = vld [vmem:[%s1446_s24 + $0x78] sm:$0xff]  ;;  %v188_v40 = vld [vmem:[%s1446_s24 + $0x80] sm:$0xff]  ;;  %v189_v42 = vld [vmem:[%s1446_s24 + $0x88] sm:$0xff] }
  0x21   : > { %1132 = vmatpush3.msra.mxu0 %v237_v6  ;;  %1245 = vmatpush3.msra.mxu1 %v237_v6  ;;  %v219_v39 = vld [vmem:[%s1446_s24 + $0x178] sm:$0xff]  ;;  %v220_v41 = vld [vmem:[%s1446_s24 + $0x180] sm:$0xff]  ;;  %v221_v43 = vld [vmem:[%s1446_s24 + $0x188] sm:$0xff] }
  0x22   : > { %1133 = vmatprep.subr.mxu0 %v236_v7  ;;  %1238 = vmatprep.subr.mxu1 %v236_v7  ;;  %v190_v44 = vld [vmem:[%s1446_s24 + $0x90] sm:$0xff]  ;;  %v191_v46 = vld [vmem:[%s1446_s24 + $0x98] sm:$0xff]  ;;  %v192_v48 = vld [vmem:[%s1446_s24 + $0xa0] sm:$0xff] }
  0x23   : > { %1134 = vmatpush3.msra.mxu0 %v236_v7  ;;  %1246 = vmatpush3.msra.mxu1 %v236_v7  ;;  %v222_v45 = vld [vmem:[%s1446_s24 + $0x190] sm:$0xff]  ;;  %v223_v47 = vld [vmem:[%s1446_s24 + $0x198] sm:$0xff]  ;;  %v224_v49 = vld [vmem:[%s1446_s24 + $0x1a0] sm:$0xff] }
  0x24   : > { %1135 = vmatprep.mubr.msk.f32.mxu0 %vm251_vm0, %v172_v8  ;;  %1183 = vmatprep.mubr.msk.f32.mxu1 %vm251_vm0, %v204_v9  ;;  %v193_v50 = vld [vmem:[%s1446_s24 + $0xa8] sm:$0xff]  ;;  %v194_v52 = vld [vmem:[%s1446_s24 + $0xb0] sm:$0xff]  ;;  %v195_v54 = vld [vmem:[%s1446_s24 + $0xb8] sm:$0xff] }
  0x25   : > { %1136 = vmatmul.mubr.msk.f32.vlgmr.msra.gmra.mxu0 %vm251_vm0, %v173_v10  ;;  %1184 = vmatmul.mubr.msk.f32.vlgmr.msra.gmra.mxu1 %vm251_vm0, %v205_v11  ;;  %v225_v51 = vld [vmem:[%s1446_s24 + $0x1a8] sm:$0xff]  ;;  %v226_v53 = vld [vmem:[%s1446_s24 + $0x1b0] sm:$0xff]  ;;  %v227_v55 = vld [vmem:[%s1446_s24 + $0x1b8] sm:$0xff] }
  0x26   : > { %1138 = vmatprep.mubr.msk.f32.mxu0 %vm251_vm0, %v174_v12  ;;  %1186 = vmatprep.mubr.msk.f32.mxu1 %vm251_vm0, %v206_v13  ;;  %v196_v56 = vld [vmem:[%s1446_s24 + $0xc0] sm:$0xff]  ;;  %v197_v58 = vld [vmem:[%s1446_s24 + $0xc8] sm:$0xff]  ;;  %v198_v60 = vld [vmem:[%s1446_s24 + $0xd0] sm:$0xff] }
  0x27   : > { %v228_v57 = vld [vmem:[%s1446_s24 + $0x1c0] sm:$0xff]  ;;  %v229_v59 = vld [vmem:[%s1446_s24 + $0x1c8] sm:$0xff]  ;;  %v230_v61 = vld [vmem:[%s1446_s24 + $0x1d0] sm:$0xff] }
  0x28   : > { %v199_v62 = vld [vmem:[%s1446_s24 + $0xd8] sm:$0xff]  ;;  %v200_v0 = vld [vmem:[%s1446_s24 + $0xe0] sm:$0xff]  ;;  %v201_v2 = vld [vmem:[%s1446_s24 + $0xe8] sm:$0xff] }
  0x29   : > { %1139 = vmatmul.mubr.msk.f32.gmra.mxu0 %vm251_vm0, %v175_v14  ;;  %1187 = vmatmul.mubr.msk.f32.gmra.mxu1 %vm251_vm0, %v207_v15  ;;  %v231_v63 = vld [vmem:[%s1446_s24 + $0x1d8] sm:$0xff]  ;;  %v232_v1 = vld [vmem:[%s1446_s24 + $0x1e0] sm:$0xff]  ;;  %v233_v3 = vld [vmem:[%s1446_s24 + $0x1e8] sm:$0xff] }
  0x2a   : > { %1141 = vmatprep.mubr.msk.f32.mxu0 %vm251_vm0, %v176_v16  ;;  %1189 = vmatprep.mubr.msk.f32.mxu1 %vm251_vm0, %v208_v17  ;;  %v202_v4 = vld [vmem:[%s1446_s24 + $0xf0] sm:$0xff]  ;;  %v203_v6 = vld [vmem:[%s1446_s24 + $0xf8] sm:$0xff]  ;;  %v1585_v8 = vld [vmem:[%s1770_s2] ss:$0 sm:$0xff] }
  0x2b   : > { %v234_v5 = vld [vmem:[%s1446_s24 + $0x1f0] sm:$0xff]  ;;  %v235_v7 = vld [vmem:[%s1446_s24 + $0x1f8] sm:$0xff] }
  0x2d   : > { %1142 = vmatmul.mubr.msk.f32.gmra.mxu0 %vm251_vm0, %v177_v18  ;;  %1190 = vmatmul.mubr.msk.f32.gmra.mxu1 %vm251_vm0, %v209_v19 }
  0x2e   : > { %1144 = vmatprep.mubr.msk.f32.mxu0 %vm251_vm0, %v178_v20  ;;  %1192 = vmatprep.mubr.msk.f32.mxu1 %vm251_vm0, %v210_v21 }
  0x31   : > { %1145 = vmatmul.mubr.msk.f32.gmra.mxu0 %vm251_vm0, %v179_v22  ;;  %1193 = vmatmul.mubr.msk.f32.gmra.mxu1 %vm251_vm0, %v211_v23 }
  0x32   : > { %1147 = vmatprep.mubr.msk.f32.mxu0 %vm251_vm0, %v180_v24  ;;  %1195 = vmatprep.mubr.msk.f32.mxu1 %vm251_vm0, %v212_v25 }
  0x35   : > { %1148 = vmatmul.mubr.msk.f32.gmra.mxu0 %vm251_vm0, %v181_v26  ;;  %1196 = vmatmul.mubr.msk.f32.gmra.mxu1 %vm251_vm0, %v213_v27 }
  0x36   : > { %1150 = vmatprep.mubr.msk.f32.mxu0 %vm251_vm0, %v182_v28  ;;  %1198 = vmatprep.mubr.msk.f32.mxu1 %vm251_vm0, %v214_v29 }
  0x39   : > { %1151 = vmatmul.mubr.msk.f32.gmra.mxu0 %vm251_vm0, %v183_v30  ;;  %1199 = vmatmul.mubr.msk.f32.gmra.mxu1 %vm251_vm0, %v215_v31 }
  0x3a   : > { %1153 = vmatprep.mubr.msk.f32.mxu0 %vm251_vm0, %v184_v32  ;;  %1201 = vmatprep.mubr.msk.f32.mxu1 %vm251_vm0, %v216_v33 }
  0x3d   : > { %1154 = vmatmul.mubr.msk.f32.gmra.mxu0 %vm251_vm0, %v185_v34  ;;  %1202 = vmatmul.mubr.msk.f32.gmra.mxu1 %vm251_vm0, %v217_v35 }
  0x3e   : > { %1156 = vmatprep.mubr.msk.f32.mxu0 %vm251_vm0, %v186_v36  ;;  %1204 = vmatprep.mubr.msk.f32.mxu1 %vm251_vm0, %v218_v37 }
  0x41   : > { %1157 = vmatmul.mubr.msk.f32.gmra.mxu0 %vm251_vm0, %v187_v38  ;;  %1205 = vmatmul.mubr.msk.f32.gmra.mxu1 %vm251_vm0, %v219_v39 }
  0x42   : > { %1159 = vmatprep.mubr.msk.f32.mxu0 %vm251_vm0, %v188_v40  ;;  %1207 = vmatprep.mubr.msk.f32.mxu1 %vm251_vm0, %v220_v41 }
  0x45   : > { %1160 = vmatmul.mubr.msk.f32.gmra.mxu0 %vm251_vm0, %v189_v42  ;;  %1208 = vmatmul.mubr.msk.f32.gmra.mxu1 %vm251_vm0, %v221_v43 }
  0x46   : > { %1162 = vmatprep.mubr.msk.f32.mxu0 %vm251_vm0, %v190_v44  ;;  %1210 = vmatprep.mubr.msk.f32.mxu1 %vm251_vm0, %v222_v45 }
  0x49   : > { %1163 = vmatmul.mubr.msk.f32.gmra.mxu0 %vm251_vm0, %v191_v46  ;;  %1211 = vmatmul.mubr.msk.f32.gmra.mxu1 %vm251_vm0, %v223_v47 }
  0x4a   : > { %1165 = vmatprep.mubr.msk.f32.mxu0 %vm251_vm0, %v192_v48  ;;  %1213 = vmatprep.mubr.msk.f32.mxu1 %vm251_vm0, %v224_v49 }
  0x4d   : > { %1166 = vmatmul.mubr.msk.f32.gmra.mxu0 %vm251_vm0, %v193_v50  ;;  %1214 = vmatmul.mubr.msk.f32.gmra.mxu1 %vm251_vm0, %v225_v51 }
  0x4e   : > { %1168 = vmatprep.mubr.msk.f32.mxu0 %vm251_vm0, %v194_v52  ;;  %1216 = vmatprep.mubr.msk.f32.mxu1 %vm251_vm0, %v226_v53 }
  0x51   : > { %1169 = vmatmul.mubr.msk.f32.gmra.mxu0 %vm251_vm0, %v195_v54  ;;  %1217 = vmatmul.mubr.msk.f32.gmra.mxu1 %vm251_vm0, %v227_v55 }
  0x52   : > { %1171 = vmatprep.mubr.msk.f32.mxu0 %vm251_vm0, %v196_v56  ;;  %1219 = vmatprep.mubr.msk.f32.mxu1 %vm251_vm0, %v228_v57 }
  0x55   : > { %1172 = vmatmul.mubr.msk.f32.gmra.mxu0 %vm251_vm0, %v197_v58  ;;  %1220 = vmatmul.mubr.msk.f32.gmra.mxu1 %vm251_vm0, %v229_v59 }
  0x56   : > { %1174 = vmatprep.mubr.msk.f32.mxu0 %vm251_vm0, %v198_v60  ;;  %1222 = vmatprep.mubr.msk.f32.mxu1 %vm251_vm0, %v230_v61 }
  0x59   : > { %1175 = vmatmul.mubr.msk.f32.gmra.mxu0 %vm251_vm0, %v199_v62  ;;  %1223 = vmatmul.mubr.msk.f32.gmra.mxu1 %vm251_vm0, %v231_v63 }
  0x5a   : > { %1177 = vmatprep.mubr.msk.f32.mxu0 %vm251_vm0, %v200_v0  ;;  %1225 = vmatprep.mubr.msk.f32.mxu1 %vm251_vm0, %v232_v1 }
  0x5d   : > { %1178 = vmatmul.mubr.msk.f32.gmra.mxu0 %vm251_vm0, %v201_v2  ;;  %1226 = vmatmul.mubr.msk.f32.gmra.mxu1 %vm251_vm0, %v233_v3 }
  0x5e   : > { %1180 = vmatprep.mubr.msk.f32.mxu0 %vm251_vm0, %v202_v4  ;;  %1228 = vmatprep.mubr.msk.f32.mxu1 %vm251_vm0, %v234_v5 }
  0x61   : > { %1181 = vmatmul.mubr.msk.f32.gmra.mxu0 %vm251_vm0, %v203_v6  ;;  %1229 = vmatmul.mubr.msk.f32.gmra.mxu1 %vm251_vm0, %v235_v7 }
  0xe5   : > { %v1137_v9 = vpop.f32.mrf.mxu0  ;;  %v1185_v10 = vpop.f32.mrf.mxu1 }
  0xe6   : > { %v516_v11 = vadd.f32 %v1137_v9, %v1585_v8  ;;  %v676_v12 = vadd.f32 %v1185_v10, %v1585_v8 }
  0xe7   : > { %v510_v13 = vpop.f32.mrf.mxu0  ;;  %v670_v14 = vpop.f32.mrf.mxu1 }
  0xe8   : > { %830 = vst [vmem:[%s1589_s4 + $0x8] sm:$0xff] %v516_v11  ;;  %862 = vst [vmem:[%s1589_s4 + $0x108] sm:$0xff] %v676_v12  ;;  %v511_v15 = vadd.f32 %v1585_v8, %v510_v13  ;;  %v671_v16 = vadd.f32 %v1585_v8, %v670_v14 }
  0xe9   : > { %v1140_v17 = vpop.f32.mrf.mxu0  ;;  %v1188_v18 = vpop.f32.mrf.mxu1 }
  0xea   : > { %829 = vst [vmem:[%s1589_s4] sm:$0xff] %v511_v15  ;;  %861 = vst [vmem:[%s1589_s4 + $0x100] sm:$0xff] %v671_v16  ;;  %v526_v19 = vadd.f32 %v1140_v17, %v1585_v8  ;;  %v686_v20 = vadd.f32 %v1188_v18, %v1585_v8 }
  0xeb   : > { %v520_v21 = vpop.f32.mrf.mxu0  ;;  %v680_v22 = vpop.f32.mrf.mxu1 }
  0xec   : > { %832 = vst [vmem:[%s1589_s4 + $0x18] sm:$0xff] %v526_v19  ;;  %864 = vst [vmem:[%s1589_s4 + $0x118] sm:$0xff] %v686_v20  ;;  %v521_v23 = vadd.f32 %v1585_v8, %v520_v21  ;;  %v681_v24 = vadd.f32 %v1585_v8, %v680_v22 }
  0xed   : > { %v1143_v25 = vpop.f32.mrf.mxu0  ;;  %v1191_v26 = vpop.f32.mrf.mxu1 }
  0xee   : > { %831 = vst [vmem:[%s1589_s4 + $0x10] sm:$0xff] %v521_v23  ;;  %863 = vst [vmem:[%s1589_s4 + $0x110] sm:$0xff] %v681_v24  ;;  %v536_v27 = vadd.f32 %v1143_v25, %v1585_v8  ;;  %v696_v28 = vadd.f32 %v1191_v26, %v1585_v8 }
  0xef   : > { %v530_v29 = vpop.f32.mrf.mxu0  ;;  %v690_v30 = vpop.f32.mrf.mxu1 }
  0xf0   : > { %834 = vst [vmem:[%s1589_s4 + $0x28] sm:$0xff] %v536_v27  ;;  %866 = vst [vmem:[%s1589_s4 + $0x128] sm:$0xff] %v696_v28  ;;  %v531_v31 = vadd.f32 %v1585_v8, %v530_v29  ;;  %v691_v32 = vadd.f32 %v1585_v8, %v690_v30 }
  0xf1   : > { %v1146_v33 = vpop.f32.mrf.mxu0  ;;  %v1194_v34 = vpop.f32.mrf.mxu1 }
  0xf2   : > { %833 = vst [vmem:[%s1589_s4 + $0x20] sm:$0xff] %v531_v31  ;;  %865 = vst [vmem:[%s1589_s4 + $0x120] sm:$0xff] %v691_v32  ;;  %v546_v35 = vadd.f32 %v1146_v33, %v1585_v8  ;;  %v706_v36 = vadd.f32 %v1194_v34, %v1585_v8 }
  0xf3   : > { %v540_v37 = vpop.f32.mrf.mxu0  ;;  %v700_v38 = vpop.f32.mrf.mxu1 }
  0xf4   : > { %836 = vst [vmem:[%s1589_s4 + $0x38] sm:$0xff] %v546_v35  ;;  %868 = vst [vmem:[%s1589_s4 + $0x138] sm:$0xff] %v706_v36  ;;  %v541_v39 = vadd.f32 %v1585_v8, %v540_v37  ;;  %v701_v40 = vadd.f32 %v1585_v8, %v700_v38 }
  0xf5   : > { %v1149_v41 = vpop.f32.mrf.mxu0  ;;  %v1197_v42 = vpop.f32.mrf.mxu1 }
  0xf6   : > { %835 = vst [vmem:[%s1589_s4 + $0x30] sm:$0xff] %v541_v39  ;;  %867 = vst [vmem:[%s1589_s4 + $0x130] sm:$0xff] %v701_v40  ;;  %v556_v43 = vadd.f32 %v1149_v41, %v1585_v8  ;;  %v716_v44 = vadd.f32 %v1197_v42, %v1585_v8 }
  0xf7   : > { %v550_v45 = vpop.f32.mrf.mxu0  ;;  %v710_v46 = vpop.f32.mrf.mxu1 }
  0xf8   : > { %838 = vst [vmem:[%s1589_s4 + $0x48] sm:$0xff] %v556_v43  ;;  %870 = vst [vmem:[%s1589_s4 + $0x148] sm:$0xff] %v716_v44  ;;  %v551_v47 = vadd.f32 %v1585_v8, %v550_v45  ;;  %v711_v48 = vadd.f32 %v1585_v8, %v710_v46 }
  0xf9   : > { %v1152_v49 = vpop.f32.mrf.mxu0  ;;  %v1200_v50 = vpop.f32.mrf.mxu1 }
  0xfa   : > { %837 = vst [vmem:[%s1589_s4 + $0x40] sm:$0xff] %v551_v47  ;;  %869 = vst [vmem:[%s1589_s4 + $0x140] sm:$0xff] %v711_v48  ;;  %v566_v51 = vadd.f32 %v1152_v49, %v1585_v8  ;;  %v726_v52 = vadd.f32 %v1200_v50, %v1585_v8 }
  0xfb   : > { %v560_v53 = vpop.f32.mrf.mxu0  ;;  %v720_v54 = vpop.f32.mrf.mxu1 }
  0xfc   : > { %840 = vst [vmem:[%s1589_s4 + $0x58] sm:$0xff] %v566_v51  ;;  %872 = vst [vmem:[%s1589_s4 + $0x158] sm:$0xff] %v726_v52  ;;  %v561_v55 = vadd.f32 %v1585_v8, %v560_v53  ;;  %v721_v56 = vadd.f32 %v1585_v8, %v720_v54 }
  0xfd   : > { %v1155_v57 = vpop.f32.mrf.mxu0  ;;  %v1203_v58 = vpop.f32.mrf.mxu1 }
  0xfe   : > { %839 = vst [vmem:[%s1589_s4 + $0x50] sm:$0xff] %v561_v55  ;;  %871 = vst [vmem:[%s1589_s4 + $0x150] sm:$0xff] %v721_v56  ;;  %v576_v59 = vadd.f32 %v1155_v57, %v1585_v8  ;;  %v736_v60 = vadd.f32 %v1203_v58, %v1585_v8 }
  0xff   : > { %v570_v61 = vpop.f32.mrf.mxu0  ;;  %v730_v62 = vpop.f32.mrf.mxu1 }
 0x100   : > { %842 = vst [vmem:[%s1589_s4 + $0x68] sm:$0xff] %v576_v59  ;;  %874 = vst [vmem:[%s1589_s4 + $0x168] sm:$0xff] %v736_v60  ;;  %v571_v63 = vadd.f32 %v1585_v8, %v570_v61  ;;  %v731_v0 = vadd.f32 %v1585_v8, %v730_v62 }
 0x101   : > { %v1158_v1 = vpop.f32.mrf.mxu0  ;;  %v1206_v2 = vpop.f32.mrf.mxu1 }
 0x102   : > { %841 = vst [vmem:[%s1589_s4 + $0x60] sm:$0xff] %v571_v63  ;;  %873 = vst [vmem:[%s1589_s4 + $0x160] sm:$0xff] %v731_v0  ;;  %v586_v3 = vadd.f32 %v1158_v1, %v1585_v8  ;;  %v746_v4 = vadd.f32 %v1206_v2, %v1585_v8 }
 0x103   : > { %v580_v5 = vpop.f32.mrf.mxu0  ;;  %v740_v6 = vpop.f32.mrf.mxu1 }
 0x104   : > { %844 = vst [vmem:[%s1589_s4 + $0x78] sm:$0xff] %v586_v3  ;;  %876 = vst [vmem:[%s1589_s4 + $0x178] sm:$0xff] %v746_v4  ;;  %v581_v7 = vadd.f32 %v1585_v8, %v580_v5  ;;  %v741_v9 = vadd.f32 %v1585_v8, %v740_v6 }
 0x105   : > { %v1161_v10 = vpop.f32.mrf.mxu0  ;;  %v1209_v11 = vpop.f32.mrf.mxu1 }
 0x106   : > { %843 = vst [vmem:[%s1589_s4 + $0x70] sm:$0xff] %v581_v7  ;;  %875 = vst [vmem:[%s1589_s4 + $0x170] sm:$0xff] %v741_v9  ;;  %v596_v12 = vadd.f32 %v1161_v10, %v1585_v8  ;;  %v756_v13 = vadd.f32 %v1209_v11, %v1585_v8 }
 0x107   : > { %v590_v14 = vpop.f32.mrf.mxu0  ;;  %v750_v15 = vpop.f32.mrf.mxu1 }
 0x108   : > { %846 = vst [vmem:[%s1589_s4 + $0x88] sm:$0xff] %v596_v12  ;;  %878 = vst [vmem:[%s1589_s4 + $0x188] sm:$0xff] %v756_v13  ;;  %v591_v16 = vadd.f32 %v1585_v8, %v590_v14  ;;  %v751_v17 = vadd.f32 %v1585_v8, %v750_v15 }
 0x109   : > { %v1164_v18 = vpop.f32.mrf.mxu0  ;;  %v1212_v19 = vpop.f32.mrf.mxu1 }
 0x10a   : > { %845 = vst [vmem:[%s1589_s4 + $0x80] sm:$0xff] %v591_v16  ;;  %877 = vst [vmem:[%s1589_s4 + $0x180] sm:$0xff] %v751_v17  ;;  %v606_v20 = vadd.f32 %v1164_v18, %v1585_v8  ;;  %v766_v21 = vadd.f32 %v1212_v19, %v1585_v8 }
 0x10b   : > { %v600_v22 = vpop.f32.mrf.mxu0  ;;  %v760_v23 = vpop.f32.mrf.mxu1 }
 0x10c   : > { %848 = vst [vmem:[%s1589_s4 + $0x98] sm:$0xff] %v606_v20  ;;  %880 = vst [vmem:[%s1589_s4 + $0x198] sm:$0xff] %v766_v21  ;;  %v601_v24 = vadd.f32 %v1585_v8, %v600_v22  ;;  %v761_v25 = vadd.f32 %v1585_v8, %v760_v23 }
 0x10d   : > { %v1167_v26 = vpop.f32.mrf.mxu0  ;;  %v1215_v27 = vpop.f32.mrf.mxu1 }
 0x10e   : > { %847 = vst [vmem:[%s1589_s4 + $0x90] sm:$0xff] %v601_v24  ;;  %879 = vst [vmem:[%s1589_s4 + $0x190] sm:$0xff] %v761_v25  ;;  %v616_v28 = vadd.f32 %v1167_v26, %v1585_v8  ;;  %v776_v29 = vadd.f32 %v1215_v27, %v1585_v8 }
 0x10f   : > { %v610_v30 = vpop.f32.mrf.mxu0  ;;  %v770_v31 = vpop.f32.mrf.mxu1 }
 0x110   : > { %850 = vst [vmem:[%s1589_s4 + $0xa8] sm:$0xff] %v616_v28  ;;  %882 = vst [vmem:[%s1589_s4 + $0x1a8] sm:$0xff] %v776_v29  ;;  %v611_v32 = vadd.f32 %v1585_v8, %v610_v30  ;;  %v771_v33 = vadd.f32 %v1585_v8, %v770_v31 }
 0x111   : > { %v1170_v34 = vpop.f32.mrf.mxu0  ;;  %v1218_v35 = vpop.f32.mrf.mxu1 }
 0x112   : > { %849 = vst [vmem:[%s1589_s4 + $0xa0] sm:$0xff] %v611_v32  ;;  %881 = vst [vmem:[%s1589_s4 + $0x1a0] sm:$0xff] %v771_v33  ;;  %v626_v36 = vadd.f32 %v1170_v34, %v1585_v8  ;;  %v786_v37 = vadd.f32 %v1218_v35, %v1585_v8 }
 0x113   : > { %v620_v38 = vpop.f32.mrf.mxu0  ;;  %v780_v39 = vpop.f32.mrf.mxu1 }
 0x114   : > { %852 = vst [vmem:[%s1589_s4 + $0xb8] sm:$0xff] %v626_v36  ;;  %884 = vst [vmem:[%s1589_s4 + $0x1b8] sm:$0xff] %v786_v37  ;;  %v621_v40 = vadd.f32 %v1585_v8, %v620_v38  ;;  %v781_v41 = vadd.f32 %v1585_v8, %v780_v39 }
 0x115   : > { %v1173_v42 = vpop.f32.mrf.mxu0  ;;  %v1221_v43 = vpop.f32.mrf.mxu1 }
 0x116   : > { %851 = vst [vmem:[%s1589_s4 + $0xb0] sm:$0xff] %v621_v40  ;;  %883 = vst [vmem:[%s1589_s4 + $0x1b0] sm:$0xff] %v781_v41  ;;  %v636_v44 = vadd.f32 %v1173_v42, %v1585_v8  ;;  %v796_v45 = vadd.f32 %v1221_v43, %v1585_v8 }
 0x117   : > { %v630_v46 = vpop.f32.mrf.mxu0  ;;  %v790_v47 = vpop.f32.mrf.mxu1 }
 0x118   : > { %854 = vst [vmem:[%s1589_s4 + $0xc8] sm:$0xff] %v636_v44  ;;  %886 = vst [vmem:[%s1589_s4 + $0x1c8] sm:$0xff] %v796_v45  ;;  %v631_v48 = vadd.f32 %v1585_v8, %v630_v46  ;;  %v791_v49 = vadd.f32 %v1585_v8, %v790_v47 }
 0x119   : > { %v1176_v50 = vpop.f32.mrf.mxu0  ;;  %v1224_v51 = vpop.f32.mrf.mxu1 }
 0x11a   : > { %853 = vst [vmem:[%s1589_s4 + $0xc0] sm:$0xff] %v631_v48  ;;  %885 = vst [vmem:[%s1589_s4 + $0x1c0] sm:$0xff] %v791_v49  ;;  %v646_v52 = vadd.f32 %v1176_v50, %v1585_v8  ;;  %v806_v53 = vadd.f32 %v1224_v51, %v1585_v8 }
 0x11b   : > { %v640_v54 = vpop.f32.mrf.mxu0  ;;  %v800_v55 = vpop.f32.mrf.mxu1 }
 0x11c   : > { %856 = vst [vmem:[%s1589_s4 + $0xd8] sm:$0xff] %v646_v52  ;;  %888 = vst [vmem:[%s1589_s4 + $0x1d8] sm:$0xff] %v806_v53  ;;  %v641_v56 = vadd.f32 %v1585_v8, %v640_v54  ;;  %v801_v57 = vadd.f32 %v1585_v8, %v800_v55 }
 0x11d   : > { %v1179_v58 = vpop.f32.mrf.mxu0  ;;  %v1227_v59 = vpop.f32.mrf.mxu1 }
 0x11e   : > { %855 = vst [vmem:[%s1589_s4 + $0xd0] sm:$0xff] %v641_v56  ;;  %887 = vst [vmem:[%s1589_s4 + $0x1d0] sm:$0xff] %v801_v57  ;;  %v656_v60 = vadd.f32 %v1179_v58, %v1585_v8  ;;  %v816_v61 = vadd.f32 %v1227_v59, %v1585_v8 }
 0x11f   : > { %v650_v62 = vpop.f32.mrf.mxu0  ;;  %v810_v63 = vpop.f32.mrf.mxu1 }
 0x120   : > { %858 = vst [vmem:[%s1589_s4 + $0xe8] sm:$0xff] %v656_v60  ;;  %890 = vst [vmem:[%s1589_s4 + $0x1e8] sm:$0xff] %v816_v61  ;;  %v651_v0 = vadd.f32 %v1585_v8, %v650_v62  ;;  %v811_v1 = vadd.f32 %v1585_v8, %v810_v63 }
 0x121   : > { %v1182_v2 = vpop.f32.mrf.mxu0  ;;  %v1230_v3 = vpop.f32.mrf.mxu1 }
 0x122   : > { %857 = vst [vmem:[%s1589_s4 + $0xe0] sm:$0xff] %v651_v0  ;;  %889 = vst [vmem:[%s1589_s4 + $0x1e0] sm:$0xff] %v811_v1  ;;  %v666_v4 = vadd.f32 %v1182_v2, %v1585_v8  ;;  %v826_v5 = vadd.f32 %v1230_v3, %v1585_v8 }
 0x123   : > { %v660_v6 = vpop.f32.mrf.mxu0  ;;  %v820_v7 = vpop.f32.mrf.mxu1 }
 0x124   : > { %860 = vst [vmem:[%s1589_s4 + $0xf8] sm:$0xff] %v666_v4  ;;  %892 = vst [vmem:[%s1589_s4 + $0x1f8] sm:$0xff] %v826_v5  ;;  %v661_v9 = vadd.f32 %v1585_v8, %v660_v6  ;;  %v821_v10 = vadd.f32 %v1585_v8, %v820_v7 }
 0x126   : > { %859 = vst [vmem:[%s1589_s4 + $0xf0] sm:$0xff] %v661_v9  ;;  %891 = vst [vmem:[%s1589_s4 + $0x1f0] sm:$0xff] %v821_v10 }
 0x127   : > { %1301 = shalt.err (!%p1298_p3)
}
 0x128   : > { %s1302_s20 = scalar_lea.hbm %s1716_s9, 8192  ;;  %s1306_s26 = scalar_lea.hbm %s1771_s3, 16384 }
 0x129   : > { %p1303_p4 = scmp.ne.s32.totalorder %s1716_s9, %s1302_s20  ;;  %p1307_p9 = scmp.lt.s32.totalorder %s1716_s9, %s1771_s3 }
 0x12a   : > { %p1308_p10 = scmp.lt.s32.totalorder %s1306_s26, %s1302_s20 }
 0x12b   : > { %p1304_p7 = pnand %p1303_p4, %p1411_p5 }
 0x12c   : > { %p1309_p11 = por %p1308_p10, %p1307_p9 }
 0x12d   : > { %p1305_p8 = pneg %p1304_p7 }
 0x12f   : > { %p1310_p12 = pnand %p1309_p11, %p1305_p8 }
 0x131   : > { %1313 = shalt.err (!%p1310_p12)
}
 0x132   : > { %s1351_s29 = smov 128   ;;  %s1352_s30 = smov 8  }
 0x133   : > { %1247 = dma.vmem_to_hbm [thread:$0]  (%p1411_p5), %s1718_s6, 8192, %s1716_s9, %s1728_s16, %s1351_s29, %s1351_s29, %s1352_s30  }
 0x134 PF: > { %p1253_p13 = scmp.ge.s32.totalorder %s1348_s15, 2  ;;  %s922_s4 = sand.u32 1, %s1336_s12  }
 0x135   : > { %s923_s5 = scalar_lea.sflag [#allocation3], %s922_s4 }
 0x136   : > { %p1250_p0 = pnand %p1253_p13, %p1415_p6 }
 0x138   : > { %p1251_p1 = pneg %p1250_p0 }
 0x13a   : > { %1331 = dma.done.wait (%p1251_p1), %s923_s5, 8192  }
 0x13b   : > { %1333 = vsyncadd (%p1251_p1), %s923_s5, 4294959104  ;;  %p13_p2 = scmp.ge.s32.totalorder %s1398_s18, 4   ;;  %s1774_s12 = smov %s1340_s13 }
 0x13c   : > { %s1775_s13 = smov %s1344_s14  ;;  %s1776_s14 = smov %s1409_s21 }
 0x13d   : > { %s1777_s15 = smov %s1398_s18  ;;  %15 = sbr.rel (!%p13_p2) target bundleno = 3 (0x3), region = 67 }
 0x142   :  { %928 = vsyncpa [#allocation3], 1 }
 0x143   :  { %930 = vsyncpa [#allocation3 + $0x1], 1 }

</bundles_post_ra>
